<compile_context>
chip_gen: v6e
topology: v6e:2x2x1
jax: 0.10.0
libtpu: 0.0.40
codegen_flags: <defaults>
</compile_context>

<pallas_src>
import functools

import jax
import jax.numpy as jnp
from jax.experimental import pallas as pl
from jax.experimental.pallas import tpu as pltpu


def _round_up(x, m):
    return ((x + m - 1) // m) * m


def _cdiv(a, b):
    return -(-a // b)


def _linear_kernel(x_ref, w_ref, b_ref, o_ref):
    """One row tile of tokens: o = x @ w + b.

    x/w arrive as bf16; the MXU accumulates in f32 and the epilogue
    (bias add, cast to the output dtype) runs in f32 on the VPU.
    """
    acc = jnp.dot(x_ref[...], w_ref[...], preferred_element_type=jnp.float32)
    o_ref[...] = (acc + b_ref[...]).astype(o_ref.dtype)


def pallas_linear(x, w, b, *, tile_m=1024, out_dtype=jnp.bfloat16,
                  min_row_blocks=2):
    """x: (M, D_in) bf16, w: (D_in, H) bf16, b: (1, H) f32 -> (M, H) out_dtype."""
    M, D_in = x.shape
    H = w.shape[1]

    # Lane-dense output only when it's ~free: real hidden_d is already a
    # multiple of 128 (no pad, no post-slice); tiny toy H (<128) stays
    # unpadded -- a masked store beats 4x write amplification + a slice pass.
    if H % 128 == 0 or H < 128:
        H_pad = H
    else:
        H_pad = _round_up(H, 128)

    # Row tiling: pad M only to a sublane multiple per block, never to a full
    # tile.  Force >= min_row_blocks grid steps so the "parallel" grid axis can
    # shard across v7x's two TensorCores even at small batch.
    M8 = _round_up(M, 8)
    g = _cdiv(M8, tile_m)
    if M8 >= 8 * min_row_blocks:
        g = max(g, min_row_blocks)
    tm = _round_up(_cdiv(M8, g), 8)
    M_pad = tm * g  # <= M8 + 8*(g-1): at most a few sublanes of dead rows.

    x_p = x if M_pad == M else jnp.pad(x, ((0, M_pad - M), (0, 0)))
    w_p = w if H_pad == H else jnp.pad(w, ((0, 0), (0, H_pad - H)))
    b_p = b if H_pad == H else jnp.pad(b, ((0, 0), (0, H_pad - H)))

    # The weight/bias have constant index_maps -> DMA'd once and revisited.
    # Single-buffer the weight once it is big enough that the (wasted) second
    # buffer matters for the VMEM budget.
    w_bytes = D_in * H_pad * w_p.dtype.itemsize
    w_mode = pl.Buffered(1) if w_bytes >= (1 << 20) else None
    w_bufs = 1 if w_mode is not None else 2

    out_itemsize = jnp.dtype(out_dtype).itemsize
    # VMEM budget derived from the actual tiles (not toy math):
    # double-buffered activation + output tiles, weight buffer(s), bias, margin.
    vmem_bytes = (2 * tm * D_in * x_p.dtype.itemsize
                  + 2 * tm * H_pad * out_itemsize
                  + w_bufs * w_bytes
                  + 2 * H_pad * b_p.dtype.itemsize
                  + (2 << 20))
    vmem_bytes = int(min(max(vmem_bytes, 16 << 20), 64 << 20))

    out = pl.pallas_call(
        _linear_kernel,
        out_shape=jax.ShapeDtypeStruct((M_pad, H_pad), out_dtype),
        grid_spec=pltpu.PrefetchScalarGridSpec(
            num_scalar_prefetch=0,
            grid=(g,),
            in_specs=[
                pl.BlockSpec((tm, D_in), lambda i: (i, 0)),
                pl.BlockSpec((D_in, H_pad), lambda i: (0, 0),
                             pipeline_mode=w_mode),
                pl.BlockSpec((1, H_pad), lambda i: (0, 0)),
            ],
            out_specs=pl.BlockSpec((tm, H_pad), lambda i: (i, 0)),
        ),
        compiler_params=pltpu.CompilerParams(
            dimension_semantics=("parallel",),  # megacore-shard the row grid
            vmem_limit_bytes=vmem_bytes,
        ),
    )(x_p, w_p, b_p)

    if M_pad == M and H_pad == H:
        return out          # common case: zero-copy return, no slice pass
    return out[:M, :H]


def patchify(images, n_patches, dtype=jnp.bfloat16):
    """images: (N, C, H, W) NCHW -> (N, n_patches^2, C * ps * ps).

    Matches the reference `patcher`: per-patch flatten order is (c, ph, pw).
    The cast to bf16 happens BEFORE the transpose so the materialized patch
    intermediate is half the HBM traffic of an f32 patch array.
    """
    N, C, H, W = images.shape
    assert H == W, "Patch method is implemented for square images only"
    ps = H // n_patches
    x = images.astype(dtype)
    x = x.reshape(N, C, n_patches, ps, n_patches, ps)
    # -> (N, patch_i, patch_j, C, ph, pw)
    x = jnp.transpose(x, (0, 2, 4, 1, 3, 5))
    return x.reshape(N, n_patches * n_patches, C * ps * ps)


@functools.partial(jax.jit, static_argnames=("n_patches",))
def vit_forward(images, w, b, *, n_patches):
    """Reproduces VisionTransformerVIT.forward up to the linear_mapper.

    `w` is expected already in (D_in, hidden_d) layout and bf16 (hoisted to
    parameter init).  Output is bf16 tokens (downstream ViT blocks run bf16).
    """
    N = images.shape[0]
    patches = patchify(images, n_patches)                 # (N, P^2, D_in) bf16
    P2, D_in = patches.shape[1], patches.shape[2]
    x = patches.reshape(N * P2, D_in)
    tokens = pallas_linear(x, w, b)                        # (N*P^2, hidden_d)
    return tokens.reshape(N, P2, w.shape[1])


def init_linear_params(key, input_d, hidden_d):
    """Deterministic init mimicking nn.Linear (uniform +-1/sqrt(fan_in)).

    The transpose to (D_in, hidden_d) and the bf16 cast are done ONCE here so
    the jitted forward path carries no per-call weight relayout/cast passes.
    """
    k_w, k_b = jax.random.split(key)
    bound = 1.0 / jnp.sqrt(float(input_d))
    # PyTorch stores weight as (hidden_d, input_d); kernel consumes (input_d, hidden_d).
    w = jax.random.uniform(k_w, (hidden_d, input_d), jnp.float32, -bound, bound)
    b = jax.random.uniform(k_b, (1, hidden_d), jnp.float32, -bound, bound)
    return w.T.astype(jnp.bfloat16), b


if __name__ == "__main__":
    # Small shapes consistent with the module:
    #   input_shape = (C=4, H=16, W=16), n_patches=4 -> patch_size=4,
    #   input_d = 4*4*4 = 64, hidden_d = 32, batch = 2.
    batch, C, H, W = 2, 4, 16, 16
    n_patches = 4
    hidden_d = 32
    input_d = C * (H // n_patches) * (W // n_patches)

    key = jax.random.PRNGKey(0)
    k_img, k_par = jax.random.split(key)
    images = jax.random.normal(k_img, (batch, C, H, W), jnp.float32)
    w_bf16, b = init_linear_params(k_par, input_d, hidden_d)

    tokens = vit_forward(images, w_bf16, b, n_patches=n_patches)
    tokens = jax.block_until_ready(tokens)
    assert tokens.shape == (batch, n_patches * n_patches, hidden_d)
    assert tokens.dtype == jnp.bfloat16

    # Same-precision reference (bf16 inputs, f32 accumulate + bias, bf16 round).
    patches_bf16 = patchify(images, n_patches)
    ref_acc = jnp.dot(patches_bf16, w_bf16,
                      preferred_element_type=jnp.float32) + b[0]
    ref_bf16 = ref_acc.astype(jnp.bfloat16)
    assert jnp.allclose(tokens.astype(jnp.float32), ref_bf16.astype(jnp.float32),
                        atol=1e-2, rtol=1e-2), "mismatch vs bf16-path reference"

    # Loose sanity check vs f32-activation reference (bounds bf16 in/out rounding).
    ref_f32 = (patchify(images, n_patches, dtype=jnp.float32)
               @ w_bf16.astype(jnp.float32) + b[0])
    assert jnp.allclose(tokens.astype(jnp.float32), ref_f32,
                        atol=5e-2, rtol=0.0), "mismatch vs f32 reference"

    print("KERNEL_OK")
</pallas_src>

<mosaic_0001>
module attributes {stable_mosaic.version = 11 : i64} {
  func.func @_linear_kernel(%arg0: i32, %arg1: memref<16x64xbf16, #tpu.memory_space<vmem>>, %arg2: memref<64x32xbf16, #tpu.memory_space<vmem>>, %arg3: memref<1x32xf32, #tpu.memory_space<vmem>>, %arg4: memref<16x32xbf16, #tpu.memory_space<vmem>>) attributes {dimension_semantics = [#tpu.dimension_semantics<parallel>], iteration_bounds = array<i64: 2>, scalar_prefetch = 0 : i64, scratch_operands = 0 : i64, tpu.core_type = #tpu.core_type<tc>, window_params = [{transform_indices = @transform_0, window_bounds = array<i64: 16, 64>}, {pipeline_mode = #tpu.pipeline_mode<synchronous>, transform_indices = @transform_1, window_bounds = array<i64: 64, 32>}, {pipeline_mode = #tpu.pipeline_mode<synchronous>, transform_indices = @transform_2, window_bounds = array<i64: 1, 32>}, {transform_indices = @transform_3, window_bounds = array<i64: 16, 32>}]} {
    %c0 = arith.constant 0 : index
    %c0_0 = arith.constant 0 : index
    %0 = vector.load %arg1[%c0, %c0_0] : memref<16x64xbf16, #tpu.memory_space<vmem>>, vector<16x64xbf16>
    %c0_1 = arith.constant 0 : index
    %c0_2 = arith.constant 0 : index
    %1 = vector.load %arg2[%c0_1, %c0_2] : memref<64x32xbf16, #tpu.memory_space<vmem>>, vector<64x32xbf16>
    %cst = arith.constant dense<0.000000e+00> : vector<16x32xf32>
    %2 = tpu.matmul %0, %1, %cst {dimension_numbers = #tpu.dot_dimension_numbers<[1], [0], [0], [1], [0, 0, 1, 1], [], []>} : vector<16x64xbf16>, vector<64x32xbf16>, vector<16x32xf32> -> vector<16x32xf32>
    %c0_3 = arith.constant 0 : index
    %c0_4 = arith.constant 0 : index
    %3 = vector.load %arg3[%c0_3, %c0_4] : memref<1x32xf32, #tpu.memory_space<vmem>>, vector<1x32xf32>
    %4 = vector.broadcast %3 : vector<1x32xf32> to vector<16x32xf32>
    %5 = arith.addf %2, %4 : vector<16x32xf32>
    %6 = arith.truncf %5 : vector<16x32xf32> to vector<16x32xbf16>
    %c0_5 = arith.constant 0 : index
    %c0_6 = arith.constant 0 : index
    %7 = vector.load %arg4[%c0_5, %c0_6] : memref<16x32xbf16, #tpu.memory_space<vmem>>, vector<16x32xbf16>
    tpu.vector_store %arg4[%c0_5, %c0_6], %6 {strides = array<i32>} : memref<16x32xbf16, #tpu.memory_space<vmem>>, vector<16x32xbf16>,
    return
  }
  func.func @transform_0(%arg0: i32) -> (i32, i32) {
    %c0_i32 = arith.constant 0 : i32
    %c0_i32_0 = arith.constant 0 : i32
    return %arg0, %c0_i32 : i32, i32
  }
  func.func @transform_1(%arg0: i32) -> (i32, i32) {
    %c0_i32 = arith.constant 0 : i32
    %c0_i32_0 = arith.constant 0 : i32
    %c0_i32_1 = arith.constant 0 : i32
    return %c0_i32, %c0_i32_0 : i32, i32
  }
  func.func @transform_2(%arg0: i32) -> (i32, i32) {
    %c0_i32 = arith.constant 0 : i32
    %c0_i32_0 = arith.constant 0 : i32
    %c0_i32_1 = arith.constant 0 : i32
    return %c0_i32, %c0_i32_0 : i32, i32
  }
  func.func @transform_3(%arg0: i32) -> (i32, i32) {
    %c0_i32 = arith.constant 0 : i32
    %c0_i32_0 = arith.constant 0 : i32
    return %arg0, %c0_i32 : i32, i32
  }
}

</mosaic_0001>

<bundles_post_ra>
// kernel: vit_forward.1
= control target key start
LH: loop header
LB: loop body
LE: loop exit
PB: predicated region body
PF: predicated region fallthrough
CT: control target
= control target key end

     0   :  { %8 = vsyncpa [#allocation3], 0  ;;  %s643_s0 = inlined_call_operand.vmem [shape: bf16[32,64], index: 0, kind: input, shape index: {}]   ;;  %s644_s1 = inlined_call_operand.vmem [shape: bf16[64,32], index: 1, kind: input, shape index: {}]   ;;  %s645_s2 = inlined_call_operand.vmem [shape: f32[1,32], index: 2, kind: input, shape index: {}]   ;;  %s646_s3 = inlined_call_operand.hbm [shape: bf16[32,32], index: 3, kind: output, shape index: {}]  }
   0x1   :  { %10 = vsyncpa [#allocation3 + $0x1], 0  ;;  %s527_s12 = smov 0   ;;  %s529_s13 = smov 0  }
   0x2   :  { %s531_s14 = smov 0   ;;  %s533_s15 = smov 0  }
   0x3 LB: > { %s548_s16 = sadd.s32 4294967295, %s500_s15   ;;  %s351_s17 = sadd.s32 4294967294, %s500_s15   ;;  %s500_s15 = sphi %s533_s15, %s652_s15   ;;  %s496_s14 = sphi %s531_s14, %s651_s14   ;;  %s492_s13 = sphi %s529_s13, %s650_s13   ;;  %s488_s12 = sphi %s527_s12, %s649_s12  }
   0x4   : > { %s552_s18 = sadd.s32 1, %s500_s15   ;;  %s91_s19 = sadd.s32 1, %s496_s14 }
   0x5   : > { %s88_s20 = ssub.s32 %s500_s15, %s552_s18  ;;  %p101_p0 = scmp.ne.s32.totalorder %s496_s14, %s492_s13 }
   0x6   : > { %p89_p1 = scmp.eq.s32.totalorder %s88_s20, 0  ;;  %p102_p2 = scmp.eq.s32.totalorder %s548_s16, 1 }
   0x7   : > { %p107_p3 = scmp.ne.s32.totalorder %s492_s13, %s488_s12  ;;  %p108_p4 = scmp.eq.s32.totalorder %s351_s17, 1 }
   0x8   : > { %s563_s21 = scalar_select %p89_p1, %s496_s14, %s91_s19  }
   0x9   : > { %p565_p5 = por %p102_p2, %p101_p0  ;;  %p569_p6 = por %p108_p4, %p107_p3 }
   0xa   : > { %p354_p7 = scmp.ge.s32.totalorder %s500_s15, 1  ;;  %p141_p8 = scmp.lt.s32.totalorder %s500_s15, 3 }
   0xc   : > { %p142_p9 = pnand %p354_p7, %p141_p8 }
   0xd   : > { %s356_s28 = sshll.u32 (!%p142_p9), %s548_s16, 1  ;;  %s162_s10 = sand.u32 (!%p142_p9), 1, %s492_s13  }
   0xe   : > { %145 = sbr.rel (%p142_p9) target bundleno = 251 (0xfb), region = 32  ;;  %p166_p10 = scmp.lt.s32.totalorder (!%p142_p9), %s356_s28, 3 }
   0xf   : > { %s355_s19 = sshll.u32 (!%p142_p9), %s162_s10, 3  ;;  %s374_s25 = sshll.u32 (!%p142_p9), %s548_s16, 7 }
  0x10   : > { %s164_s20 = scalar_lea.vmem (!%p142_p9), [#allocation2], %s355_s19  ;;  %s603_s29 = scalar_lea.sflag (!%p142_p9), [#allocation3], %s162_s10 }
  0x11   : > { %s289_s24 = sshll.u32 (!%p142_p9), %s164_s20, 4  ;;  %s504_s16 = smov (!%p142_p9), [#allocation2]   ;;  %s596_s24 = int_to_ptr.vmem [resolvable:$true] %s289_s24 }
  0x12   : > { %s440_s30 = scalar_lea.vmem (!%p142_p9), %s596_s24, 128 }
  0x13   : > { %v435_v0 = vld [vmem:[%s644_s1 + $0x18] sm:$0xff]   ;;  %v502_v1 = vmov 0.0   ;;  %v436_v2 = vld [vmem:[%s644_s1 + $0x10] sm:$0xff]   ;;  %vm503_vm0 = vmmov 0   ;;  %s654_s28 = smov (!%p166_p10, %s356_s28), 3  ;;  %v437_v3 = vld [vmem:[%s644_s1 + $0x8] sm:$0xff]   ;;  %p441_p11 = scmp.ne.s32.totalorder %s596_s24, %s440_s30 }
  0x14   : > { %380 = vmatprep.subr.bf16.mxu0 %v502_v1  ;;  %388 = vmatprep.mubr.msk.bf16.mxu0 %vm503_vm0, %v502_v1  ;;  %s357_s4 = sshll.u32 %s654_s28, 2  ;;  %v438_v4 = vld [vmem:[%s644_s1] sm:$0xff]   ;;  %vm219_vm1 = vcmask 523264   ;;  %vm272_vm2 = vcmask 257024   ;;  %s601_s28 = scalar_lea.hbm %s646_s3, %s374_s25 }
  0x15   : > { %381 = vmatpush3.bf16.msra.mxu0 %v435_v0  ;;  %s169_s7 = scalar_lea.vmem %s643_s0, %s357_s4  ;;  %v358_v6 = vld [vmem:[%s645_s2] ss:$0 sm:$0xff]  ;;  %p442_p12 = pnand %p441_p11, %p565_p5 }
  0x16   : > { %382 = vmatprep.subr.bf16.mxu0 %v502_v1  ;;  %v439_v5 = vld [vmem:[%s169_s7] sm:$0xff]   ;;  %s444_s4 = sshll.u32 %s504_s16, 4  ;;  %s445_s4 = int_to_ptr.vmem [resolvable:$false] %s444_s4 }
  0x17   : > { %p443_p13 = pneg %p442_p12  ;;  %s446_s5 = scalar_lea.vmem %s445_s4, 256 }
  0x18   : > { %p447_p0 = scmp.lt.s32.totalorder %s596_s24, %s445_s4  ;;  %p448_p1 = scmp.lt.s32.totalorder %s446_s5, %s440_s30 }
  0x19   : > { %383 = vmatpush3.bf16.msra.mxu0 %v436_v2 }
  0x1a   : > { %384 = vmatprep.subr.bf16.mxu0 %v502_v1  ;;  %p449_p2 = por %p448_p1, %p447_p0 }
  0x1c   : > { %p450_p3 = pnand %p449_p2, %p443_p13 }
  0x1d   : > { %385 = vmatpush3.bf16.msra.mxu0 %v437_v3 }
  0x1e   : > { %386 = vmatprep.subr.bf16.mxu0 %v502_v1 }
  0x21   : > { %387 = vmatpush3.bf16.msra.mxu0 %v438_v4 }
  0x24   : > { %389 = vmatmul.mubr.msk.bf16.vlgmr.msra.gmra.mxu0 %vm219_vm1, %v439_v5 }
  0xe4   : > { %v257_v7 = vpop.f32.mrf.mxu0 }
  0xe5   : > { %v258_v8 = vadd.f32 %v358_v6, %v257_v7 }
  0xe6   : > { %v390_v9 = vpop.f32.mrf.mxu0 }
  0xe7   : > { %v372_v10 = vpack.c.bf16 %v258_v8, %v258_v8 }
  0xe8   : > { %v260_v11 = vpop.f32.mrf.mxu0 }
  0xe9   : > { %273 = vst.msk [vmem:[%s164_s20] sm:$0xf] %vm272_vm2, %v372_v10  ;;  %v261_v12 = vadd.f32 %v358_v6, %v260_v11 }
  0xea   : > { %v391_v13 = vpop.f32.mrf.mxu0 }
  0xeb   : > { %v373_v14 = vpack.c.bf16 %v261_v12, %v261_v12 }
  0xed   : > { %274 = vst.msk [vmem:[%s164_s20 + $0x4] sm:$0xf] %vm272_vm2, %v373_v14 }
  0xee   : > { %453 = shalt.err (!%p450_p3)
}
  0xef   : > { %s454_s6 = scalar_lea.hbm %s601_s28, 128  ;;  %s458_s9 = scalar_lea.hbm %s646_s3, 256 }
  0xf0   : > { %p455_p4 = scmp.ne.s32.totalorder %s601_s28, %s454_s6  ;;  %p459_p9 = scmp.lt.s32.totalorder %s601_s28, %s646_s3 }
  0xf1   : > { %p460_p10 = scmp.lt.s32.totalorder %s458_s9, %s454_s6 }
  0xf2   : > { %p456_p7 = pnand %p455_p4, %p565_p5 }
  0xf3   : > { %p461_p11 = por %p460_p10, %p459_p9 }
  0xf4   : > { %p457_p8 = pneg %p456_p7 }
  0xf6   : > { %p462_p12 = pnand %p461_p11, %p457_p8 }
  0xf8   : > { %465 = shalt.err (!%p462_p12)
}
  0xf9   : > { %s505_s17 = smov 64   ;;  %s506_s19 = smov 4  }
  0xfa   : > { %392 = dma.vmem_to_hbm [thread:$0]  (%p565_p5), %s596_s24, 128, %s601_s28, %s603_s29, %s505_s17, %s505_s17, %s506_s19  }
  0xfb PF: > { %p398_p13 = scmp.ge.s32.totalorder %s500_s15, 2  ;;  %s304_s20 = sand.u32 1, %s488_s12  }
  0xfc   : > { %s305_s25 = scalar_lea.sflag [#allocation3], %s304_s20 }
  0xfd   : > { %p395_p0 = pnand %p398_p13, %p569_p6 }
  0xff   : > { %p396_p1 = pneg %p395_p0 }
 0x101   : > { %483 = dma.done.wait (%p396_p1), %s305_s25, 128  }
 0x102   : > { %485 = vsyncadd (%p396_p1), %s305_s25, 4294967168  ;;  %p13_p2 = scmp.ge.s32.totalorder %s552_s18, 4   ;;  %s649_s12 = smov %s492_s13 }
 0x103   : > { %s650_s13 = smov %s496_s14  ;;  %s651_s14 = smov %s563_s21 }
 0x104   : > { %s652_s15 = smov %s552_s18  ;;  %15 = sbr.rel (!%p13_p2) target bundleno = 3 (0x3), region = 67 }
 0x109   :  { %310 = vsyncpa [#allocation3], 1 }
 0x10a   :  { %312 = vsyncpa [#allocation3 + $0x1], 1 }

</bundles_post_ra>
